<compile_context>
chip_gen: v7x
topology: tpu7x:2x2x1
jax: 0.10.0
libtpu: 0.0.40
codegen_flags: <defaults>
</compile_context>

<pallas_src>
import functools

import jax
import jax.numpy as jnp
from jax.experimental import pallas as pl
from jax.experimental.pallas import tpu as pltpu

LANES = 128   # lane width: every hidden/output dim is padded to this
SUB = 16      # sublane rounding that is safe for bf16-packed operands


def _round_up(n, m):
    return ((n + m - 1) // m) * m


def _mlp_kernel(x_ref, w_ref, b_ref, o_ref, *, in_pad):
    """Whole 4-layer MLP for one batch tile.

    x_ref : (TB, in_pad)           bf16  batch tile (grid axis 0)
    w_ref : (in_pad + 3*128, 128)  bf16  all 4 weights packed & zero-padded
    b_ref : (4, 128)               f32   all 4 biases packed & zero-padded
    o_ref : (TB, 128)              f32   lane-dense; true outputs in [:, :out]
    """
    b = b_ref[...]          # load all biases once
    h = x_ref[...]          # bf16 activations straight into the MXU

    offs = (0, in_pad, in_pad + LANES, in_pad + 2 * LANES)   # 8/16-aligned
    rows = (in_pad, LANES, LANES, LANES)

    for li in range(4):
        w = w_ref[offs[li]:offs[li] + rows[li], :]              # static slice
        h = jnp.dot(h, w, preferred_element_type=jnp.float32)   # f32 accum
        h = h + b[li:li + 1, :]
        if li < 3:
            h = jnp.maximum(h, 0.0).astype(jnp.bfloat16)        # ReLU, back to bf16

    o_ref[...] = h.astype(o_ref.dtype)


def init_params(key, input_size, output_size):
    """Deterministic init mimicking nn.Linear's U(-1/sqrt(fan_in), 1/sqrt(fan_in)).

    Weights stored as (in, out), i.e. transposed vs. PyTorch, so y = x @ W + b.
    """
    dims = [(input_size, 64), (64, 32), (32, 16), (16, output_size)]
    params = {}
    for i, (fan_in, fan_out) in enumerate(dims, start=1):
        key, kw, kb = jax.random.split(key, 3)
        bound = 1.0 / jnp.sqrt(jnp.float32(fan_in))
        params[f"w{i}"] = jax.random.uniform(
            kw, (fan_in, fan_out), jnp.float32, -bound, bound)
        params[f"b{i}"] = jax.random.uniform(
            kb, (1, fan_out), jnp.float32, -bound, bound)
    return params


def pack_params(params, input_size, output_size):
    """Pack the 4 (W, b) pairs into one bf16 weight slab + one f32 bias slab.

    Weight slab rows: [W1 (in_pad rows) | W2 (128) | W3 (128) | W4 (128)],
    each padded with zeros to 128 output lanes. Zero padding keeps the padded
    lanes exactly zero through every layer (bias pad = 0, ReLU(0) = 0).
    """
    in_pad = _round_up(max(input_size, SUB), SUB)
    dims = [(input_size, 64), (64, 32), (32, 16), (16, output_size)]
    rows = [in_pad, LANES, LANES, LANES]

    w_slab = jnp.zeros((sum(rows), LANES), jnp.float32)
    b_slab = jnp.zeros((4, LANES), jnp.float32)
    off = 0
    for i, ((fi, fo), r) in enumerate(zip(dims, rows), start=1):
        w_slab = w_slab.at[off:off + fi, :fo].set(params[f"w{i}"])
        b_slab = b_slab.at[i - 1, :fo].set(params[f"b{i}"].reshape(-1))
        off += r

    return w_slab.astype(jnp.bfloat16), b_slab, in_pad


def bigger_network_forward(x, packed, *, output_size, block_b=512):
    """x: (B, input_size) f32. packed: output of pack_params."""
    w_slab, b_slab, in_pad = packed
    B, input_size = x.shape

    # Batch tile: largest of {block_b, padded B}; pad B so the grid is exact.
    B_pad = _round_up(max(B, SUB), SUB)
    tb = min(block_b, B_pad)
    B_pad = _round_up(B_pad, tb)

    # Pad features to in_pad, batch to B_pad; cast MXU input to bf16 once.
    x_p = jnp.zeros((B_pad, in_pad), jnp.bfloat16)
    x_p = x_p.at[:B, :input_size].set(x.astype(jnp.bfloat16))

    kernel = functools.partial(_mlp_kernel, in_pad=in_pad)

    out_padded = pl.pallas_call(
        kernel,
        out_shape=jax.ShapeDtypeStruct((B_pad, LANES), jnp.float32),
        grid=(B_pad // tb,),
        in_specs=[
            pl.BlockSpec((tb, in_pad), lambda i: (i, 0)),        # batch-tiled x
            pl.BlockSpec(w_slab.shape, lambda i: (0, 0)),        # weights resident
            pl.BlockSpec(b_slab.shape, lambda i: (0, 0)),        # biases resident
        ],
        out_specs=pl.BlockSpec((tb, LANES), lambda i: (i, 0)),   # lane-dense store
        compiler_params=pltpu.CompilerParams(
            dimension_semantics=("parallel",),                   # megacore-friendly
        ),
    )(x_p, w_slab, b_slab)

    return out_padded[:B, :output_size]


def reference_forward(x, params):
    """Pure-JAX reference with the same numerics (bf16 MXU inputs, f32 accum)."""
    h = x
    for i in range(1, 5):
        w = params[f"w{i}"].astype(jnp.bfloat16)
        h = jnp.dot(h.astype(jnp.bfloat16), w,
                    preferred_element_type=jnp.float32) + params[f"b{i}"]
        if i < 4:
            h = jnp.maximum(h, 0.0)
    return h


if __name__ == "__main__":
    input_size = 32
    output_size = 8
    batch = 8

    key = jax.random.PRNGKey(0)
    key, kx = jax.random.split(key)
    x = jax.random.normal(kx, (batch, input_size), jnp.float32)
    params = init_params(key, input_size, output_size)
    packed = pack_params(params, input_size, output_size)

    out = bigger_network_forward(x, packed, output_size=output_size)
    out = jax.block_until_ready(out)

    ref = reference_forward(x, params)
    assert out.shape == (batch, output_size)
    assert jnp.allclose(out, ref, atol=1e-4, rtol=1e-4), \
        float(jnp.max(jnp.abs(out - ref)))

    print("KERNEL_OK")
</pallas_src>

<mosaic_0001>
module attributes {stable_mosaic.version = 11 : i64} {
  func.func @_mlp_kernel(%arg0: i32, %arg1: memref<16x32xbf16, #tpu.memory_space<vmem>>, %arg2: memref<416x128xbf16, #tpu.memory_space<vmem>>, %arg3: memref<4x128xf32, #tpu.memory_space<vmem>>, %arg4: memref<16x128xf32, #tpu.memory_space<vmem>>) attributes {dimension_semantics = [#tpu.dimension_semantics<parallel>], iteration_bounds = array<i64: 1>, scalar_prefetch = 0 : i64, scratch_operands = 0 : i64, tpu.core_type = #tpu.core_type<tc>, window_params = [{transform_indices = @transform_0, window_bounds = array<i64: 16, 32>}, {pipeline_mode = #tpu.pipeline_mode<synchronous>, transform_indices = @transform_1, window_bounds = array<i64: 416, 128>}, {pipeline_mode = #tpu.pipeline_mode<synchronous>, transform_indices = @transform_2, window_bounds = array<i64: 4, 128>}, {transform_indices = @transform_3, window_bounds = array<i64: 16, 128>}]} {
    %c0 = arith.constant 0 : index
    %c0_0 = arith.constant 0 : index
    %0 = vector.load %arg3[%c0, %c0_0] : memref<4x128xf32, #tpu.memory_space<vmem>>, vector<4x128xf32>
    %c0_1 = arith.constant 0 : index
    %c0_2 = arith.constant 0 : index
    %1 = vector.load %arg1[%c0_1, %c0_2] : memref<16x32xbf16, #tpu.memory_space<vmem>>, vector<16x32xbf16>
    %c0_3 = arith.constant 0 : index
    %c0_4 = arith.constant 0 : index
    %2 = vector.load %arg2[%c0_3, %c0_4] : memref<416x128xbf16, #tpu.memory_space<vmem>>, vector<32x128xbf16>
    %cst = arith.constant dense<0.000000e+00> : vector<16x128xf32>
    %3 = tpu.matmul %1, %2, %cst {dimension_numbers = #tpu.dot_dimension_numbers<[1], [0], [0], [1], [0, 0, 1, 1], [], []>} : vector<16x32xbf16>, vector<32x128xbf16>, vector<16x128xf32> -> vector<16x128xf32>
    %4 = vector.extract_strided_slice %0 {offsets = [0, 0], sizes = [1, 128], strides = [1, 1]} : vector<4x128xf32> to vector<1x128xf32>
    %5 = vector.broadcast %4 : vector<1x128xf32> to vector<16x128xf32>
    %6 = arith.addf %3, %5 : vector<16x128xf32>
    %cst_5 = arith.constant 0.000000e+00 : f32
    %7 = vector.broadcast %cst_5 : f32 to vector<16x128xf32>
    %8 = arith.maximumf %6, %7 : vector<16x128xf32>
    %9 = arith.truncf %8 : vector<16x128xf32> to vector<16x128xbf16>
    %c32 = arith.constant 32 : index
    %c0_6 = arith.constant 0 : index
    %10 = vector.load %arg2[%c32, %c0_6] : memref<416x128xbf16, #tpu.memory_space<vmem>>, vector<128x128xbf16>
    %cst_7 = arith.constant dense<0.000000e+00> : vector<16x128xf32>
    %11 = tpu.matmul %9, %10, %cst_7 {dimension_numbers = #tpu.dot_dimension_numbers<[1], [0], [0], [1], [0, 0, 1, 1], [], []>} : vector<16x128xbf16>, vector<128x128xbf16>, vector<16x128xf32> -> vector<16x128xf32>
    %12 = vector.extract_strided_slice %0 {offsets = [1, 0], sizes = [1, 128], strides = [1, 1]} : vector<4x128xf32> to vector<1x128xf32>
    %13 = vector.broadcast %12 : vector<1x128xf32> to vector<16x128xf32>
    %14 = arith.addf %11, %13 : vector<16x128xf32>
    %cst_8 = arith.constant 0.000000e+00 : f32
    %15 = vector.broadcast %cst_8 : f32 to vector<16x128xf32>
    %16 = arith.maximumf %14, %15 : vector<16x128xf32>
    %17 = arith.truncf %16 : vector<16x128xf32> to vector<16x128xbf16>
    %c160 = arith.constant 160 : index
    %c0_9 = arith.constant 0 : index
    %18 = vector.load %arg2[%c160, %c0_9] : memref<416x128xbf16, #tpu.memory_space<vmem>>, vector<128x128xbf16>
    %cst_10 = arith.constant dense<0.000000e+00> : vector<16x128xf32>
    %19 = tpu.matmul %17, %18, %cst_10 {dimension_numbers = #tpu.dot_dimension_numbers<[1], [0], [0], [1], [0, 0, 1, 1], [], []>} : vector<16x128xbf16>, vector<128x128xbf16>, vector<16x128xf32> -> vector<16x128xf32>
    %20 = vector.extract_strided_slice %0 {offsets = [2, 0], sizes = [1, 128], strides = [1, 1]} : vector<4x128xf32> to vector<1x128xf32>
    %21 = vector.broadcast %20 : vector<1x128xf32> to vector<16x128xf32>
    %22 = arith.addf %19, %21 : vector<16x128xf32>
    %cst_11 = arith.constant 0.000000e+00 : f32
    %23 = vector.broadcast %cst_11 : f32 to vector<16x128xf32>
    %24 = arith.maximumf %22, %23 : vector<16x128xf32>
    %25 = arith.truncf %24 : vector<16x128xf32> to vector<16x128xbf16>
    %c288 = arith.constant 288 : index
    %c0_12 = arith.constant 0 : index
    %26 = vector.load %arg2[%c288, %c0_12] : memref<416x128xbf16, #tpu.memory_space<vmem>>, vector<128x128xbf16>
    %cst_13 = arith.constant dense<0.000000e+00> : vector<16x128xf32>
    %27 = tpu.matmul %25, %26, %cst_13 {dimension_numbers = #tpu.dot_dimension_numbers<[1], [0], [0], [1], [0, 0, 1, 1], [], []>} : vector<16x128xbf16>, vector<128x128xbf16>, vector<16x128xf32> -> vector<16x128xf32>
    %28 = vector.extract_strided_slice %0 {offsets = [3, 0], sizes = [1, 128], strides = [1, 1]} : vector<4x128xf32> to vector<1x128xf32>
    %29 = vector.broadcast %28 : vector<1x128xf32> to vector<16x128xf32>
    %30 = arith.addf %27, %29 : vector<16x128xf32>
    %c0_14 = arith.constant 0 : index
    %c0_15 = arith.constant 0 : index
    %31 = vector.load %arg4[%c0_14, %c0_15] : memref<16x128xf32, #tpu.memory_space<vmem>>, vector<16x128xf32>
    tpu.vector_store %arg4[%c0_14, %c0_15], %30 {strides = array<i32>} : memref<16x128xf32, #tpu.memory_space<vmem>>, vector<16x128xf32>,
    return
  }
  func.func @transform_0(%arg0: i32) -> (i32, i32) {
    %c0_i32 = arith.constant 0 : i32
    %c0_i32_0 = arith.constant 0 : i32
    return %arg0, %c0_i32 : i32, i32
  }
  func.func @transform_1(%arg0: i32) -> (i32, i32) {
    %c0_i32 = arith.constant 0 : i32
    %c0_i32_0 = arith.constant 0 : i32
    %c0_i32_1 = arith.constant 0 : i32
    return %c0_i32, %c0_i32_0 : i32, i32
  }
  func.func @transform_2(%arg0: i32) -> (i32, i32) {
    %c0_i32 = arith.constant 0 : i32
    %c0_i32_0 = arith.constant 0 : i32
    %c0_i32_1 = arith.constant 0 : i32
    return %c0_i32, %c0_i32_0 : i32, i32
  }
  func.func @transform_3(%arg0: i32) -> (i32, i32) {
    %c0_i32 = arith.constant 0 : i32
    %c0_i32_0 = arith.constant 0 : i32
    return %arg0, %c0_i32 : i32, i32
  }
}

</mosaic_0001>

<bundles_post_ra>
// kernel: tpu_custom_call.1
= control target key start
LH: loop header
LB: loop body
LE: loop exit
PB: predicated region body
PF: predicated region fallthrough
CT: control target
= control target key end

     0   :  { %8 = vsyncpa [#allocation3], 0  ;;  %s821_s0 = inlined_call_operand.hbm [shape: bf16[16,32], index: 0, kind: input, shape index: {}]   ;;  %s822_s1 = inlined_call_operand.hbm [shape: bf16[416,128], index: 1, kind: input, shape index: {}]   ;;  %s823_s2 = inlined_call_operand.vmem [shape: f32[4,128], index: 2, kind: input, shape index: {}]   ;;  %s824_s3 = inlined_call_operand.hbm [shape: f32[16,128], index: 3, kind: output, shape index: {}]  }
   0x1   :  { %9 = vsyncpa [#allocation6], 0 }
   0x2   :  { %10 = vsyncpa [#allocation4], 0  ;;  %s707_s12 = smov [#allocation2]   ;;  %s635_s16 = scalar_lea.hbm %s821_s0, 128 }
   0x3   :  { %s16_s13 = sshll.u32 %s707_s12, 4  ;;  %p636_p0 = scmp.ne.s32.totalorder %s821_s0, %s635_s16  ;;  %s17_s13 = int_to_ptr.vmem [resolvable:$true] %s16_s13 }
   0x4   :  { %p639_p1 = scmp.lt.u32.totalorder %s635_s16, %s821_s0 }
   0x6   :  { %p641_p2 = pnand %p639_p1, %p636_p0 }
   0x8   :  { %644 = shalt.err (!%p641_p2)
}
   0x9   :  { %s645_s21 = scalar_lea.vmem %s17_s13, 128  ;;  %p650_p4 = scmp.lt.s32.totalorder %s17_s13, %s17_s13 }
   0xa   :  { %p646_p3 = scmp.ne.s32.totalorder %s17_s13, %s645_s21  ;;  %p651_p5 = scmp.lt.s32.totalorder %s645_s21, %s645_s21 }
   0xc   :  { %p652_p6 = por %p651_p5, %p650_p4 }
   0xe   :  { %p653_p7 = pnand %p652_p6, %p646_p3 }
  0x10   :  { %656 = shalt.err (!%p653_p7)
}
  0x11   :  { %s708_s22 = smov 64   ;;  %s709_s23 = smov 4  }
  0x12   :  { %22 = dma.hbm_to_vmem [thread:$0]  %s821_s0, 128, %s17_s13, [#allocation3], %s708_s22, %s708_s22, %s709_s23  }
  0x13   :  { %s710_s26 = smov [#allocation5]   ;;  %s657_s30 = scalar_lea.hbm %s822_s1, 3328 }
  0x14   :  { %s28_s27 = sshll.u32 %s710_s26, 4  ;;  %p658_p8 = scmp.ne.s32.totalorder %s822_s1, %s657_s30  ;;  %s29_s27 = int_to_ptr.vmem [resolvable:$true] %s28_s27 }
  0x15   :  { %p661_p9 = scmp.lt.u32.totalorder %s657_s30, %s822_s1 }
  0x17   :  { %p663_p10 = pnand %p661_p9, %p658_p8 }
  0x19   :  { %666 = shalt.err (!%p663_p10)
}
  0x1a   :  { %s667_s8 = scalar_lea.vmem %s29_s27, 3328  ;;  %p672_p12 = scmp.lt.s32.totalorder %s29_s27, %s29_s27 }
  0x1b   :  { %p668_p11 = scmp.ne.s32.totalorder %s29_s27, %s667_s8  ;;  %p673_p13 = scmp.lt.s32.totalorder %s667_s8, %s667_s8 }
  0x1d   :  { %p674_p0 = por %p673_p13, %p672_p12 }
  0x1f   :  { %p675_p1 = pnand %p674_p0, %p668_p11 }
  0x21   :  { %678 = shalt.err (!%p675_p1)
}
  0x22   :  { %34 = dma.hbm_to_vmem [thread:$0]  %s822_s1, 3328, %s29_s27, [#allocation6], %s708_s22, %s708_s22, %s709_s23  }
  0x23   :  { %701 = dma.done.wait [#allocation3], 128  }
  0x24   :  { %702 = vsyncadd [#allocation3], 4294967168 }
  0x25   :  { %703 = dma.done.wait [#allocation6], 3328  }
  0x26   :  { %704 = vsyncadd [#allocation6], 4294963968  ;;  %v711_v0 = vmov 0.0   ;;  %vm712_vm0 = vmmov 0   ;;  %v608_v1 = vld [vmem:[#allocation5] sm:$0xff]   ;;  %v609_v2 = vld [vmem:[#allocation5 + $0x8] sm:$0xff]   ;;  %v51_v18 = vlaneseq }
  0x27   :  { %531 = vmatprep.subr.bf16.mxu0 %v711_v0  ;;  %535 = vmatprep.mubr.msk.bf16.mxu0 %vm712_vm0, %v711_v0  ;;  %v611_v3 = vld [vmem:[#allocation5 + $0x10] sm:$0xff]   ;;  %v610_v4 = vld [vmem:[#allocation2] sm:$0xff]   ;;  %vm72_vm1 = vcmask 261120   ;;  %v613_v6 = vld [vmem:[#allocation5 + $0x20] sm:$0xff]  }
  0x28   :  { %539 = vmatprep.subr.bf16.mxu1 %v711_v0  ;;  %555 = vmatprep.mubr.msk.bf16.mxu1 %vm712_vm0, %v711_v0  ;;  %v612_v5 = vld [vmem:[#allocation5 + $0x18] sm:$0xff]   ;;  %v614_v7 = vld [vmem:[#allocation5 + $0x28] sm:$0xff]   ;;  %v615_v8 = vld [vmem:[#allocation5 + $0x30] sm:$0xff]   ;;  %v784_v19 = vshrl.u32 %v51_v18, 7 }
  0x29   :  { %532 = vmatpush3.bf16.msra.mxu0 %v608_v1  ;;  %540 = vmatpush3.bf16.msra.mxu1 %v611_v3  ;;  %v616_v9 = vld [vmem:[#allocation5 + $0x38] sm:$0xff]   ;;  %v617_v10 = vld [vmem:[#allocation5 + $0x40] sm:$0xff]   ;;  %v618_v11 = vld [vmem:[#allocation5 + $0x48] sm:$0xff]  }
  0x2a   :  { %533 = vmatprep.subr.bf16.mxu0 %v711_v0  ;;  %541 = vmatprep.subr.bf16.mxu1 %v711_v0  ;;  %v619_v12 = vld [vmem:[#allocation5 + $0x50] sm:$0xff]   ;;  %v620_v13 = vld [vmem:[#allocation5 + $0x58] sm:$0xff]   ;;  %v621_v14 = vld [vmem:[#allocation5 + $0x60] sm:$0xff]   ;;  %v53_v20 = vsub.s32 0, %v784_v19  ;;  %v138_v40 = vsub.s32 1, %v784_v19  ;;  %v250_v53 = vsub.s32 2, %v784_v19 }
  0x2b   :  { %v622_v15 = vld [vmem:[#allocation5 + $0x68] sm:$0xff]   ;;  %v623_v16 = vld [vmem:[#allocation5 + $0x70] sm:$0xff]   ;;  %v624_v17 = vld [vmem:[#allocation5 + $0x78] sm:$0xff]   ;;  %v362_v1 = vsub.s32 3, %v784_v19 }
  0x2c   :  { %v790_v21 = vld [vmem:[%s823_s2] sm:$0xf]  ;;  %v625_v32 = vld [vmem:[#allocation5 + $0x80] sm:$0xff]   ;;  %v626_v33 = vld [vmem:[#allocation5 + $0x88] sm:$0xff]   ;;  %s713_s2 = smov [#allocation7]  }
  0x2d   :  { %534 = vmatpush3.bf16.msra.mxu0 %v609_v2  ;;  %542 = vmatpush3.bf16.msra.mxu1 %v612_v5  ;;  %v54_v22 = vrot.slane %v790_v21, %v53_v20  ;;  %v627_v34 = vld [vmem:[#allocation5 + $0x90] sm:$0xff]   ;;  %v628_v35 = vld [vmem:[#allocation5 + $0x98] sm:$0xff]   ;;  %v629_v36 = vld [vmem:[#allocation5 + $0xa0] sm:$0xff]   ;;  %v139_v41 = vrot.slane %v790_v21, %v138_v40  ;;  %v251_v54 = vrot.slane %v790_v21, %v250_v53  ;;  %s460_s11 = sshll.u32 %s713_s2, 4  ;;  %s461_s11 = int_to_ptr.vmem [resolvable:$true] %s460_s11 }
  0x2e   :  { %559 = vmatprep.subr.bf16.mxu0 %v711_v0  ;;  %543 = vmatprep.subr.bf16.mxu1 %v711_v0  ;;  %v630_v37 = vld [vmem:[#allocation5 + $0xa8] sm:$0xff]   ;;  %v631_v38 = vld [vmem:[#allocation5 + $0xb0] sm:$0xff]   ;;  %v632_v39 = vld [vmem:[#allocation5 + $0xb8] sm:$0xff]   ;;  %s679_s12 = scalar_lea.vmem %s461_s11, 256  ;;  %p684_p3 = scmp.lt.s32.totalorder %s461_s11, %s461_s11 }
  0x2f   :  { %v633_v51 = vld [vmem:[#allocation5 + $0xc0] sm:$0xff]   ;;  %v634_v52 = vld [vmem:[#allocation5 + $0xc8] sm:$0xff]   ;;  %p680_p2 = scmp.ne.s32.totalorder %s461_s11, %s679_s12  ;;  %p685_p4 = scmp.lt.s32.totalorder %s679_s12, %s679_s12 }
  0x30   :  { %536 = vmatmul.mubr.msk.bf16.vlgmr.msra.gmra.mrb[0].mxu0 %vm72_vm1, %v610_v4 }
  0x31   :  { %575 = vmatprep.mubr.msk.bf16.mxu0 %vm712_vm0, %v711_v0  ;;  %544 = vmatpush3.bf16.msra.mxu1 %v613_v6  ;;  %p686_p5 = por %p685_p4, %p684_p3 }
  0x32   :  { %545 = vmatprep.subr.bf16.mxu1 %v711_v0  ;;  %560 = vmatpush3.bf16.msra.mxu0 %v619_v12 }
  0x33   :  { %561 = vmatprep.subr.bf16.mxu0 %v711_v0  ;;  %p687_p6 = pnand %p686_p5, %p680_p2 }
  0x35   :  { %546 = vmatpush3.bf16.msra.mxu1 %v614_v7 }
  0x36   :  { %547 = vmatprep.subr.bf16.mxu1 %v711_v0  ;;  %562 = vmatpush3.bf16.msra.mxu0 %v620_v13 }
  0x37   :  { %563 = vmatprep.subr.bf16.mxu0 %v711_v0 }
  0x39   :  { %548 = vmatpush3.bf16.msra.mxu1 %v615_v8 }
  0x3a   :  { %549 = vmatprep.subr.bf16.mxu1 %v711_v0  ;;  %564 = vmatpush3.bf16.msra.mxu0 %v621_v14 }
  0x3b   :  { %565 = vmatprep.subr.bf16.mxu0 %v711_v0 }
  0x3d   :  { %550 = vmatpush3.bf16.msra.mxu1 %v616_v9 }
  0x3e   :  { %551 = vmatprep.subr.bf16.mxu1 %v711_v0  ;;  %566 = vmatpush3.bf16.msra.mxu0 %v622_v15 }
  0x3f   :  { %567 = vmatprep.subr.bf16.mxu0 %v711_v0 }
  0x41   :  { %552 = vmatpush3.bf16.msra.mxu1 %v617_v10 }
  0x42   :  { %553 = vmatprep.subr.bf16.mxu1 %v711_v0  ;;  %568 = vmatpush3.bf16.msra.mxu0 %v623_v16 }
  0x43   :  { %569 = vmatprep.subr.bf16.mxu0 %v711_v0 }
  0x45   :  { %554 = vmatpush3.bf16.msra.mxu1 %v618_v11 }
  0x46   :  { %579 = vmatprep.subr.bf16.mxu1 %v711_v0  ;;  %570 = vmatpush3.bf16.msra.mxu0 %v624_v17 }
  0x47   :  { %571 = vmatprep.subr.bf16.mxu0 %v711_v0 }
  0x4a   :  { %572 = vmatpush3.bf16.msra.mxu0 %v625_v32 }
  0x4b   :  { %573 = vmatprep.subr.bf16.mxu0 %v711_v0 }
  0x4e   :  { %574 = vmatpush3.bf16.msra.mxu0 %v626_v33 }
 0x103   :  { %v110_v23 = vpop.f32.mrb[0].mxu0 }
 0x104   :  { %v111_v24 = vadd.f32 %v110_v23, %v54_v22  ;;  %v537_v25 = vpop.f32.mrb[1].mxu0 }
 0x105   :  { %v113_v26 = vpop.f32.mrb[2].mxu0 }
 0x106   :  { %v114_v27 = vadd.f32 %v113_v26, %v54_v22  ;;  %v538_v28 = vpop.f32.mrb[3].mxu0  ;;  %v117_v29 = vmax.f32 %v111_v24, 0.0 }
 0x108   :  { %v118_v30 = vmax.f32 %v114_v27, 0.0 }
 0x10a   :  { %v119_v31 = vpack.c.bf16 %v118_v30, %v117_v29 }
 0x10c   :  { %556 = vmatmul.mubr.bf16.vlgmr.msra.gmra.mrb[0].mxu1 %v119_v31 }
 0x10d   :  { %595 = vmatprep.mubr.msk.bf16.mxu1 %vm712_vm0, %v711_v0  ;;  %580 = vmatpush3.bf16.msra.mxu1 %v627_v34 }
 0x10e   :  { %581 = vmatprep.subr.bf16.mxu1 %v711_v0 }
 0x111   :  { %582 = vmatpush3.bf16.msra.mxu1 %v628_v35 }
 0x112   :  { %583 = vmatprep.subr.bf16.mxu1 %v711_v0 }
 0x115   :  { %584 = vmatpush3.bf16.msra.mxu1 %v629_v36 }
 0x116   :  { %585 = vmatprep.subr.bf16.mxu1 %v711_v0 }
 0x119   :  { %586 = vmatpush3.bf16.msra.mxu1 %v630_v37 }
 0x11a   :  { %587 = vmatprep.subr.bf16.mxu1 %v711_v0 }
 0x11d   :  { %588 = vmatpush3.bf16.msra.mxu1 %v631_v38 }
 0x11e   :  { %589 = vmatprep.subr.bf16.mxu1 %v711_v0 }
 0x121   :  { %590 = vmatpush3.bf16.msra.mxu1 %v632_v39 }
 0x122   :  { %591 = vmatprep.subr.bf16.mxu1 %v711_v0 }
 0x125   :  { %592 = vmatpush3.bf16.msra.mxu1 %v633_v51 }
 0x126   :  { %593 = vmatprep.subr.bf16.mxu1 %v711_v0  ;;  %v363_v0 = vrot.slane %v790_v21, %v362_v1 }
 0x129   :  { %594 = vmatpush3.bf16.msra.mxu1 %v634_v52 }
 0x1df   :  { %v222_v42 = vpop.f32.mrb[0].mxu1 }
 0x1e0   :  { %v223_v43 = vadd.f32 %v222_v42, %v139_v41  ;;  %v557_v44 = vpop.f32.mrb[1].mxu1 }
 0x1e1   :  { %v225_v45 = vpop.f32.mrb[2].mxu1 }
 0x1e2   :  { %v226_v46 = vadd.f32 %v225_v45, %v139_v41  ;;  %v558_v47 = vpop.f32.mrb[3].mxu1  ;;  %v229_v48 = vmax.f32 %v223_v43, 0.0 }
 0x1e4   :  { %v230_v49 = vmax.f32 %v226_v46, 0.0 }
 0x1e6   :  { %v231_v50 = vpack.c.bf16 %v230_v49, %v229_v48 }
 0x1e8   :  { %576 = vmatmul.mubr.bf16.vlgmr.msra.gmra.mrb[4].mxu0 %v231_v50 }
 0x2bb   :  { %v334_v55 = vpop.f32.mrb[4].mxu0 }
 0x2bc   :  { %v335_v56 = vadd.f32 %v334_v55, %v251_v54  ;;  %v577_v57 = vpop.f32.mrb[5].mxu0 }
 0x2bd   :  { %v337_v58 = vpop.f32.mrb[6].mxu0 }
 0x2be   :  { %v338_v59 = vadd.f32 %v337_v58, %v251_v54  ;;  %v578_v60 = vpop.f32.mrb[7].mxu0  ;;  %v341_v61 = vmax.f32 %v335_v56, 0.0 }
 0x2c0   :  { %v342_v62 = vmax.f32 %v338_v59, 0.0 }
 0x2c2   :  { %v343_v63 = vpack.c.bf16 %v342_v62, %v341_v61 }
 0x2c4   :  { %596 = vmatmul.mubr.bf16.vlgmr.msra.gmra.mrb[4].mxu1 %v343_v63 }
 0x397   :  { %v446_v2 = vpop.f32.mrb[4].mxu1 }
 0x398   :  { %v447_v3 = vadd.f32 %v446_v2, %v363_v0  ;;  %v597_v4 = vpop.f32.mrb[5].mxu1 }
 0x399   :  { %v449_v5 = vpop.f32.mrb[6].mxu1 }
 0x39a   :  { %453 = vst [vmem:[#allocation7] sm:$0xff] %v447_v3  ;;  %v450_v6 = vadd.f32 %v449_v5, %v363_v0  ;;  %v598_v7 = vpop.f32.mrb[7].mxu1 }
 0x39c   :  { %454 = vst [vmem:[#allocation7 + $0x8] sm:$0xff] %v450_v6 }
 0x39d   :  { %690 = shalt.err (!%p687_p6)
}
 0x39e   :  { %s691_s15 = scalar_lea.hbm %s824_s3, 256 }
 0x39f   :  { %p692_p7 = scmp.ne.s32.totalorder %s824_s3, %s691_s15  ;;  %p695_p8 = scmp.lt.u32.totalorder %s691_s15, %s824_s3 }
 0x3a1   :  { %p697_p9 = pnand %p695_p8, %p692_p7 }
 0x3a3   :  { %700 = shalt.err (!%p697_p9)
}
 0x3a4   :  { %s714_s20 = smov 128   ;;  %s715_s21 = smov 8  }
 0x3a5   :  { %466 = dma.vmem_to_hbm [thread:$0]  %s461_s11, 256, %s824_s3, [#allocation4], %s714_s20, %s714_s20, %s715_s21  }
 0x3a6   :  { %705 = dma.done.wait [#allocation4], 256  }
 0x3a7   :  { %706 = vsyncadd [#allocation4], 4294967040 }
 0x3a8   :  { %470 = vsyncpa [#allocation3], 1 }
 0x3a9   :  { %471 = vsyncpa [#allocation6], 1 }
 0x3aa   :  { %472 = vsyncpa [#allocation4], 1 }

</bundles_post_ra>
